<compile_context>
chip_gen: v7x
topology: tpu7x:2x2x1
jax: 0.10.0
libtpu: 0.0.40
codegen_flags: <defaults>
</compile_context>

<pallas_src>
import jax
import jax.numpy as jnp
from jax.experimental import pallas as pl
from jax.experimental.pallas import tpu as pltpu

H_LAYER1 = 50
H_LAYER2 = 20
LANES = 128
MAX_BATCH_BLOCK = 2048       # raised from 256: fewer grid steps at large B
LAYER1_MXU_MIN_BB = 128      # use MXU for layer 1 at/above this batch block


def _round_up(x, m):
    return ((x + m - 1) // m) * m


def _slab_layout(dim_s, dim_a, dim_output):
    """Row offsets of each section inside the packed (rows, 128) f32 slab.

    All sections start on 8-row boundaries.  W2 occupies a full 128-row
    section (rows >= H_LAYER1 are zero) so layer 2 can run as a lane-dense
    128x128 matmul.  W3 is stored transposed, one row per output column.
    """
    assert H_LAYER1 <= LANES and H_LAYER2 <= LANES and dim_output <= LANES
    r_w1s = 0                                   # W1 rows for s: (dim_s, 128)
    r_w1a = _round_up(r_w1s + dim_s, 8)         # W1 rows for a: (dim_a, 128)
    r_b1 = _round_up(r_w1a + dim_a, 8)          # b1 row:        (1, 128)
    r_w2 = _round_up(r_b1 + 1, 8)               # W2 section:    (128, 128)
    r_b2 = r_w2 + LANES                         # b2 row:        (1, 128)
    r_w3 = _round_up(r_b2 + 1, 8)               # W3^T rows:     (dim_out, 128)
    n_w3 = _round_up(dim_output, 8)
    r_b3 = r_w3 + n_w3                          # b3 row:        (1, 128)
    rows = _round_up(r_b3 + 1, 8)
    return dict(r_w1s=r_w1s, r_w1a=r_w1a, r_b1=r_b1, r_w2=r_w2, r_b2=r_b2,
                r_w3=r_w3, n_w3=n_w3, r_b3=r_b3, rows=rows)


def _make_critic_kernel(dim_s, dim_a, dim_out, bb):
    lay = _slab_layout(dim_s, dim_a, dim_out)
    r_w1s, r_w1a, r_b1 = lay["r_w1s"], lay["r_w1a"], lay["r_b1"]
    r_w2, r_b2 = lay["r_w2"], lay["r_b2"]
    r_w3, n_w3, r_b3 = lay["r_w3"], lay["n_w3"], lay["r_b3"]
    use_mxu_layer1 = bb >= LAYER1_MXU_MIN_BB

    def kernel(s_ref, a_ref, p_ref, o_ref):
        s = s_ref[...]                                        # (bb, dim_s)
        a = a_ref[...]                                        # (bb, dim_a)

        # ---- layer 1: (dim_s + dim_a) -> 50, lane-dense to 128 --------------
        if use_mxu_layer1:
            # Two tiny MXU dots (no concat of s/a); frees the VALU slot.
            acc1 = jnp.dot(s, p_ref[r_w1s:r_w1s + dim_s, :],
                           preferred_element_type=jnp.float32)
            acc1 = acc1 + jnp.dot(a, p_ref[r_w1a:r_w1a + dim_a, :],
                                  preferred_element_type=jnp.float32)
        else:
            # Tiny batch block: VPU broadcast-MACs, no extra MXU round trip.
            acc1 = s[:, 0:1] * p_ref[r_w1s:r_w1s + 1, :]
            for k in range(1, dim_s):
                acc1 = acc1 + s[:, k:k + 1] * p_ref[r_w1s + k:r_w1s + k + 1, :]
            for k in range(dim_a):
                acc1 = acc1 + a[:, k:k + 1] * p_ref[r_w1a + k:r_w1a + k + 1, :]
        # lanes >= H_LAYER1 are exactly 0 (zero weight cols, zero bias lanes).
        a1 = jnp.maximum(acc1 + p_ref[r_b1:r_b1 + 1, :], 0.0)   # (bb, 128)

        # ---- layer 2: 50 -> 20 as a full 128x128 lane-dense MXU pass ---------
        w2 = p_ref[r_w2:r_w2 + LANES, :]                         # (128, 128)
        a2 = jnp.maximum(
            jnp.dot(a1, w2, preferred_element_type=jnp.float32)
            + p_ref[r_b2:r_b2 + 1, :], 0.0)                      # (bb, 128)

        # ---- layer 3: 20 -> dim_out -----------------------------------------
        if dim_out == 1:
            # VPU multiply + XLU lane reduce; keeps the critical path off MXU.
            w3 = p_ref[r_w3:r_w3 + 1, :]                         # (1, 128)
            y = jnp.sum(a2 * w3, axis=-1, keepdims=True)         # (bb, 1)
            o_ref[...] = (y + p_ref[r_b3:r_b3 + 1, 0:1]).astype(o_ref.dtype)
        else:
            # Single MXU dot with transposed RHS (contract lane dims).
            w3t = p_ref[r_w3:r_w3 + n_w3, :]                     # (n_w3, 128)
            y = jax.lax.dot_general(a2, w3t, (((1,), (1,)), ((), ())),
                                    preferred_element_type=jnp.float32)
            o_ref[...] = (y[:, 0:dim_out]
                          + p_ref[r_b3:r_b3 + 1, 0:dim_out]).astype(o_ref.dtype)

    return kernel


def _pick_batch_block(B):
    """Largest batch block that (a) divides B, (b) is a multiple of 8 (or the
    whole batch), (c) is <= MAX_BATCH_BLOCK, and (d) yields >= 2 grid steps
    whenever B >= 16 so v7x can shard the grid across its 2 TensorCores."""
    if B % 8 != 0:
        return B                       # single block == full array shape
    cap = MAX_BATCH_BLOCK if B < 16 else min(MAX_BATCH_BLOCK, B // 2)
    cap = min(cap, B)
    bb = (cap // 8) * 8
    while bb >= 8 and B % bb != 0:
        bb -= 8
    return bb if bb >= 8 else B


def critic_forward(s, a, slab, dim_output):
    """s: (B, dim_s), a: (B, dim_a), slab: packed params. Returns (B, dim_output)."""
    B, dim_s = s.shape
    _, dim_a = a.shape

    bb = _pick_batch_block(B)
    assert B % bb == 0
    grid = (B // bb,)

    kernel = _make_critic_kernel(dim_s, dim_a, dim_output, bb)

    flops = 2 * B * ((dim_s + dim_a) * H_LAYER1
                     + H_LAYER1 * H_LAYER2
                     + H_LAYER2 * dim_output)
    bytes_accessed = 4 * (s.size + a.size + slab.size + B * dim_output)

    return pl.pallas_call(
        kernel,
        out_shape=jax.ShapeDtypeStruct((B, dim_output), jnp.float32),
        grid=grid,
        in_specs=[
            pl.BlockSpec((bb, dim_s), lambda i: (i, 0)),
            pl.BlockSpec((bb, dim_a), lambda i: (i, 0)),
            pl.BlockSpec(slab.shape, lambda i: (0, 0)),
        ],
        out_specs=pl.BlockSpec((bb, dim_output), lambda i: (i, 0)),
        compiler_params=pltpu.CompilerParams(
            dimension_semantics=("parallel",)),
        cost_estimate=pl.CostEstimate(
            flops=flops, transcendentals=0, bytes_accessed=bytes_accessed),
    )(s, a, slab)


def init_params(key, dim_input, dim_output):
    """Deterministic init mimicking nn.Linear's U(-1/sqrt(fan_in), 1/sqrt(fan_in)).
    Weights are stored as (in_features, out_features) = W^T."""
    ks = jax.random.split(key, 6)

    def linear(kw, kb, fan_in, fan_out):
        bound = 1.0 / jnp.sqrt(jnp.float32(fan_in))
        w = jax.random.uniform(kw, (fan_in, fan_out), jnp.float32, -bound, bound)
        b = jax.random.uniform(kb, (1, fan_out), jnp.float32, -bound, bound)
        return w, b

    w1, b1 = linear(ks[0], ks[1], dim_input, H_LAYER1)
    w2, b2 = linear(ks[2], ks[3], H_LAYER1, H_LAYER2)
    w3, b3 = linear(ks[4], ks[5], H_LAYER2, dim_output)
    return (w1, b1, w2, b2, w3, b3)


def pack_params(params, dim_s, dim_a, dim_output):
    """Pack all weights/biases into one (rows, 128) f32 slab (built once).

    NOTE: the kernel reads full 128-lane rows and a full 128-row W2 section,
    so every padding lane/row MUST stay exactly zero for correctness.
    """
    w1, b1, w2, b2, w3, b3 = params
    lay = _slab_layout(dim_s, dim_a, dim_output)
    slab = jnp.zeros((lay["rows"], LANES), jnp.float32)
    # layer 1: split W1 rows between the s-block and the a-block of the slab.
    slab = slab.at[lay["r_w1s"]:lay["r_w1s"] + dim_s, 0:H_LAYER1].set(w1[:dim_s])
    slab = slab.at[lay["r_w1a"]:lay["r_w1a"] + dim_a, 0:H_LAYER1].set(w1[dim_s:])
    slab = slab.at[lay["r_b1"], 0:H_LAYER1].set(b1.reshape(-1))
    # layer 2 (rows H_LAYER1..127 of the 128-row section stay zero).
    slab = slab.at[lay["r_w2"]:lay["r_w2"] + H_LAYER1, 0:H_LAYER2].set(w2)
    slab = slab.at[lay["r_b2"], 0:H_LAYER2].set(b2.reshape(-1))
    # layer 3: W3^T rows (one per output column).
    slab = slab.at[lay["r_w3"]:lay["r_w3"] + dim_output, 0:H_LAYER2].set(w3.T)
    slab = slab.at[lay["r_b3"], 0:dim_output].set(b3.reshape(-1))
    return slab


def _reference(s, a, params):
    w1, b1, w2, b2, w3, b3 = params
    x = jnp.concatenate([s, a], axis=1)
    r1 = jnp.maximum(x @ w1 + b1, 0.0)
    r2 = jnp.maximum(r1 @ w2 + b2, 0.0)
    return r2 @ w3 + b3


if __name__ == "__main__":
    # Mountain-car continuous: state dim 2, action dim 1 -> dim_input = 3.
    key = jax.random.PRNGKey(0)
    k_s, k_a, k_p, k_s2, k_a2 = jax.random.split(key, 5)

    dim_s, dim_a, dim_output = 2, 1, 1
    dim_input = dim_s + dim_a

    params = init_params(k_p, dim_input, dim_output)
    slab = pack_params(params, dim_s, dim_a, dim_output)   # one-time packing

    # --- small batch (latency path: VPU layer 1, single grid step) ----------
    batch = 8
    s = jax.random.normal(k_s, (batch, dim_s), jnp.float32)
    a = jax.random.normal(k_a, (batch, dim_a), jnp.float32)
    y = critic_forward(s, a, slab, dim_output)
    jax.block_until_ready(y)
    y_ref = _reference(s, a, params)
    assert y.shape == (batch, dim_output)
    assert jnp.allclose(y, y_ref, atol=1e-5, rtol=1e-5)

    # --- larger batch (MXU layer-1 path, >=2 grid steps for v7x megacore) ---
    batch2 = 256
    s2 = jax.random.normal(k_s2, (batch2, dim_s), jnp.float32)
    a2 = jax.random.normal(k_a2, (batch2, dim_a), jnp.float32)
    y2 = critic_forward(s2, a2, slab, dim_output)
    jax.block_until_ready(y2)
    y2_ref = _reference(s2, a2, params)
    assert y2.shape == (batch2, dim_output)
    assert jnp.allclose(y2, y2_ref, atol=1e-4, rtol=1e-4)

    print("KERNEL_OK")
</pallas_src>

<mosaic_0001>
module attributes {stable_mosaic.version = 11 : i64} {
  func.func @kernel(%arg0: i32, %arg1: memref<8x2xf32, #tpu.memory_space<vmem>>, %arg2: memref<8x1xf32, #tpu.memory_space<vmem>>, %arg3: memref<176x128xf32, #tpu.memory_space<vmem>>, %arg4: memref<8x1xf32, #tpu.memory_space<vmem>>) attributes {dimension_semantics = [#tpu.dimension_semantics<parallel>], iteration_bounds = array<i64: 1>, scalar_prefetch = 0 : i64, scratch_operands = 0 : i64, tpu.core_type = #tpu.core_type<tc>, window_params = [{transform_indices = @transform_0, window_bounds = array<i64: 8, 2>}, {transform_indices = @transform_1, window_bounds = array<i64: 8, 1>}, {pipeline_mode = #tpu.pipeline_mode<synchronous>, transform_indices = @transform_2, window_bounds = array<i64: 176, 128>}, {transform_indices = @transform_3, window_bounds = array<i64: 8, 1>}]} {
    %c0 = arith.constant 0 : index
    %c0_0 = arith.constant 0 : index
    %0 = vector.load %arg1[%c0, %c0_0] : memref<8x2xf32, #tpu.memory_space<vmem>>, vector<8x2xf32>
    %c0_1 = arith.constant 0 : index
    %c0_2 = arith.constant 0 : index
    %1 = vector.load %arg2[%c0_1, %c0_2] : memref<8x1xf32, #tpu.memory_space<vmem>>, vector<8x1xf32>
    %2 = vector.extract_strided_slice %0 {offsets = [0, 0], sizes = [8, 1], strides = [1, 1]} : vector<8x2xf32> to vector<8x1xf32>
    %c0_3 = arith.constant 0 : index
    %c0_4 = arith.constant 0 : index
    %3 = vector.load %arg3[%c0_3, %c0_4] : memref<176x128xf32, #tpu.memory_space<vmem>>, vector<1x128xf32>
    %4 = vector.broadcast %2 : vector<8x1xf32> to vector<8x128xf32>
    %5 = vector.broadcast %3 : vector<1x128xf32> to vector<8x128xf32>
    %6 = arith.mulf %4, %5 : vector<8x128xf32>
    %7 = vector.extract_strided_slice %0 {offsets = [0, 1], sizes = [8, 1], strides = [1, 1]} : vector<8x2xf32> to vector<8x1xf32>
    %c1 = arith.constant 1 : index
    %c0_5 = arith.constant 0 : index
    %8 = vector.load %arg3[%c1, %c0_5] : memref<176x128xf32, #tpu.memory_space<vmem>>, vector<1x128xf32>
    %9 = vector.broadcast %7 : vector<8x1xf32> to vector<8x128xf32>
    %10 = vector.broadcast %8 : vector<1x128xf32> to vector<8x128xf32>
    %11 = arith.mulf %9, %10 : vector<8x128xf32>
    %12 = arith.addf %6, %11 : vector<8x128xf32>
    %c8 = arith.constant 8 : index
    %c0_6 = arith.constant 0 : index
    %13 = vector.load %arg3[%c8, %c0_6] : memref<176x128xf32, #tpu.memory_space<vmem>>, vector<1x128xf32>
    %14 = vector.broadcast %1 : vector<8x1xf32> to vector<8x128xf32>
    %15 = vector.broadcast %13 : vector<1x128xf32> to vector<8x128xf32>
    %16 = arith.mulf %14, %15 : vector<8x128xf32>
    %17 = arith.addf %12, %16 : vector<8x128xf32>
    %c16 = arith.constant 16 : index
    %c0_7 = arith.constant 0 : index
    %18 = vector.load %arg3[%c16, %c0_7] : memref<176x128xf32, #tpu.memory_space<vmem>>, vector<1x128xf32>
    %19 = vector.broadcast %18 : vector<1x128xf32> to vector<8x128xf32>
    %20 = arith.addf %17, %19 : vector<8x128xf32>
    %cst = arith.constant 0.000000e+00 : f32
    %21 = vector.broadcast %cst : f32 to vector<8x128xf32>
    %22 = arith.maximumf %20, %21 : vector<8x128xf32>
    %c24 = arith.constant 24 : index
    %c0_8 = arith.constant 0 : index
    %23 = vector.load %arg3[%c24, %c0_8] : memref<176x128xf32, #tpu.memory_space<vmem>>, vector<128x128xf32>
    %cst_9 = arith.constant dense<0.000000e+00> : vector<8x128xf32>
    %24 = tpu.matmul %22, %23, %cst_9 {dimension_numbers = #tpu.dot_dimension_numbers<[1], [0], [0], [1], [0, 0, 1, 1], [], []>} : vector<8x128xf32>, vector<128x128xf32>, vector<8x128xf32> -> vector<8x128xf32>
    %c152 = arith.constant 152 : index
    %c0_10 = arith.constant 0 : index
    %25 = vector.load %arg3[%c152, %c0_10] : memref<176x128xf32, #tpu.memory_space<vmem>>, vector<1x128xf32>
    %26 = vector.broadcast %25 : vector<1x128xf32> to vector<8x128xf32>
    %27 = arith.addf %24, %26 : vector<8x128xf32>
    %cst_11 = arith.constant 0.000000e+00 : f32
    %28 = vector.broadcast %cst_11 : f32 to vector<8x128xf32>
    %29 = arith.maximumf %27, %28 : vector<8x128xf32>
    %c160 = arith.constant 160 : index
    %c0_12 = arith.constant 0 : index
    %30 = vector.load %arg3[%c160, %c0_12] : memref<176x128xf32, #tpu.memory_space<vmem>>, vector<1x128xf32>
    %31 = vector.broadcast %30 : vector<1x128xf32> to vector<8x128xf32>
    %32 = arith.mulf %29, %31 : vector<8x128xf32>
    %cst_13 = arith.constant dense<0.000000e+00> : vector<8xf32>
    %33 = vector.multi_reduction <add>, %32, %cst_13 [1] : vector<8x128xf32> to vector<8xf32>
    %34 = vector.shape_cast %33 : vector<8xf32> to vector<8x1xf32>
    %c168 = arith.constant 168 : index
    %c0_14 = arith.constant 0 : index
    %35 = vector.load %arg3[%c168, %c0_14] : memref<176x128xf32, #tpu.memory_space<vmem>>, vector<1x1xf32>
    %36 = vector.broadcast %35 : vector<1x1xf32> to vector<8x1xf32>
    %37 = arith.addf %34, %36 : vector<8x1xf32>
    %c0_15 = arith.constant 0 : index
    %c0_16 = arith.constant 0 : index
    %38 = vector.load %arg4[%c0_15, %c0_16] : memref<8x1xf32, #tpu.memory_space<vmem>>, vector<8x1xf32>
    tpu.vector_store %arg4[%c0_15, %c0_16], %37 {strides = array<i32>} : memref<8x1xf32, #tpu.memory_space<vmem>>, vector<8x1xf32>,
    return
  }
  func.func @transform_0(%arg0: i32) -> (i32, i32) {
    %c0_i32 = arith.constant 0 : i32
    %c0_i32_0 = arith.constant 0 : i32
    return %arg0, %c0_i32 : i32, i32
  }
  func.func @transform_1(%arg0: i32) -> (i32, i32) {
    %c0_i32 = arith.constant 0 : i32
    %c0_i32_0 = arith.constant 0 : i32
    return %arg0, %c0_i32 : i32, i32
  }
  func.func @transform_2(%arg0: i32) -> (i32, i32) {
    %c0_i32 = arith.constant 0 : i32
    %c0_i32_0 = arith.constant 0 : i32
    %c0_i32_1 = arith.constant 0 : i32
    return %c0_i32, %c0_i32_0 : i32, i32
  }
  func.func @transform_3(%arg0: i32) -> (i32, i32) {
    %c0_i32 = arith.constant 0 : i32
    %c0_i32_0 = arith.constant 0 : i32
    return %arg0, %c0_i32 : i32, i32
  }
}

</mosaic_0001>

<bundles_post_ra>
// kernel: tpu_custom_call.1
= control target key start
LH: loop header
LB: loop body
LE: loop exit
PB: predicated region body
PF: predicated region fallthrough
CT: control target
= control target key end

     0   :  { %8 = vsyncpa [#allocation3], 0  ;;  %s303_s12 = smov [#allocation2]   ;;  %s352_s0 = inlined_call_operand.vmem [shape: f32[8,2], index: 0, kind: input, shape index: {}]   ;;  %s353_s1 = inlined_call_operand.vmem [shape: f32[8,1], index: 1, kind: input, shape index: {}]   ;;  %s354_s2 = inlined_call_operand.hbm [shape: f32[176,128], index: 2, kind: input, shape index: {}]   ;;  %s355_s3 = inlined_call_operand.vmem [shape: f32[8,1], index: 3, kind: output, shape index: {}]  }
   0x1   :  { %s18_s13 = sshll.u32 %s303_s12, 4  ;;  %s279_s16 = scalar_lea.hbm %s354_s2, 2816  ;;  %s19_s13 = int_to_ptr.vmem [resolvable:$true] %s18_s13 }
   0x2   :  { %p280_p0 = scmp.ne.s32.totalorder %s354_s2, %s279_s16  ;;  %p283_p1 = scmp.lt.u32.totalorder %s279_s16, %s354_s2 }
   0x4   :  { %p285_p2 = pnand %p283_p1, %p280_p0 }
   0x6   :  { %288 = shalt.err (!%p285_p2)
}
   0x7   :  { %s289_s21 = scalar_lea.vmem %s19_s13, 2816  ;;  %p294_p4 = scmp.lt.s32.totalorder %s19_s13, %s19_s13 }
   0x8   :  { %p290_p3 = scmp.ne.s32.totalorder %s19_s13, %s289_s21  ;;  %p295_p5 = scmp.lt.s32.totalorder %s289_s21, %s289_s21 }
   0xa   :  { %p296_p6 = por %p295_p5, %p294_p4 }
   0xc   :  { %p297_p7 = pnand %p296_p6, %p290_p3 }
   0xe   :  { %300 = shalt.err (!%p297_p7)
}
   0xf   :  { %s304_s22 = smov 128   ;;  %s305_s23 = smov 8  }
  0x10   :  { %24 = dma.hbm_to_vmem [thread:$0]  %s354_s2, 2816, %s19_s13, [#allocation3], %s304_s22, %s304_s22, %s305_s23  }
  0x11   :  { %301 = dma.done.wait [#allocation3], 2816  }
  0x12   :  { %302 = vsyncadd [#allocation3], 4294964480  ;;  %v306_v0 = vmov 0   ;;  %v307_v1 = vmov 0.0|0.0   ;;  %v28_v2 = vld [vmem:[%s352_s0] sm:$0xff]  ;;  %v71_v4 = vld [vmem:[#allocation2 + $0x18] sm:$0xff] }
  0x13   :  { %275 = vset.pattern.permute.xlu0 %v306_v0  ;;  %277 = vset.pattern.permute.xlu1 %v306_v0  ;;  %v29_v3 = vld [vmem:[%s353_s1] sm:$0xff]  ;;  %v73_v6 = vld [vmem:[#allocation2 + $0x28] sm:$0xff]  ;;  %v74_v7 = vld [vmem:[#allocation2 + $0x30] sm:$0xff]  ;;  %v308_v10 = vmov 1   ;;  %vm309_vm0 = vmmov 0   ;;  %v310_v16 = vmov 0.0  }
  0x14   :  { %243 = vmatprep.subr.bf16.mxu0 %v307_v1  ;;  %33 = vperm.xlu0 %275, %v28_v2   ;;  %v72_v5 = vld [vmem:[#allocation2 + $0x20] sm:$0xff]  ;;  %v247_v9 = vpack.c.bf16 %v74_v7, %v73_v6  ;;  %v75_v11 = vld [vmem:[#allocation2 + $0x38] sm:$0xff]  ;;  %v77_v14 = vld [vmem:[#allocation2 + $0x48] sm:$0xff]  ;;  %vm177_vm1 = vcmask 7168  }
  0x15   :  { %55 = vperm.xlu1 %277, %v29_v3   ;;  %v244_v8 = vpack.c.bf16 %v72_v5, %v71_v4  ;;  %v76_v12 = vld [vmem:[#allocation2 + $0x40] sm:$0xff]  ;;  %v78_v15 = vld [vmem:[#allocation2 + $0x50] sm:$0xff]  ;;  %240 = vmatprep.mubr.msk.f32.mxu0 %vm309_vm0, %v310_v16  ;;  %v79_v18 = vld [vmem:[#allocation2 + $0x58] sm:$0xff] }
  0x16   :  { %v250_v13 = vpack.c.bf16 %v76_v12, %v75_v11  ;;  %v253_v17 = vpack.c.bf16 %v78_v15, %v77_v14  ;;  %v80_v19 = vld [vmem:[#allocation2 + $0x60] sm:$0xff]  ;;  %v81_v21 = vld [vmem:[#allocation2 + $0x68] sm:$0xff]  ;;  %v82_v22 = vld [vmem:[#allocation2 + $0x70] sm:$0xff] }
  0x17   :  { %245 = vmatpush3.bf16.msra.mxu0 %v244_v8  ;;  %v256_v20 = vpack.c.bf16 %v80_v19, %v79_v18  ;;  %v259_v23 = vpack.c.bf16 %v82_v22, %v81_v21  ;;  %v83_v24 = vld [vmem:[#allocation2 + $0x78] sm:$0xff]  ;;  %v84_v25 = vld [vmem:[#allocation2 + $0x80] sm:$0xff]  ;;  %v85_v27 = vld [vmem:[#allocation2 + $0x88] sm:$0xff] }
  0x18   :  { %276 = vset.pattern.permute.xlu0 %v308_v10  ;;  %246 = vmatprep.subr.bf16.mxu0 %v307_v1  ;;  %v262_v26 = vpack.c.bf16 %v84_v25, %v83_v24  ;;  %v86_v28 = vld [vmem:[#allocation2 + $0x90] sm:$0xff]  ;;  %v184_v31 = vld [vmem:[#allocation2] ss:$0 sm:$0xff]  ;;  %v185_v32 = vld [vmem:[#allocation2 + $0x1] ss:$0 sm:$0xff] }
  0x19   :  { %43 = vperm.xlu0 %276, %v28_v2   ;;  %v265_v29 = vpack.c.bf16 %v86_v28, %v85_v27  ;;  %v186_v33 = vld [vmem:[#allocation2 + $0x8] ss:$0 sm:$0xff]  ;;  %v187_v40 = vld [vmem:[#allocation2 + $0x10] ss:$0 sm:$0xff]  ;;  %v188_v44 = vld [vmem:[#allocation2 + $0x98] ss:$0 sm:$0xff] }
  0x1a   :  { %v189_v48 = vld [vmem:[#allocation2 + $0xa0] ss:$0 sm:$0xff]  ;;  %v190_v51 = vld [vmem:[#allocation2 + $0xa8] ss:$0 sm:$0xff] }
  0x1b   :  { %248 = vmatpush3.bf16.msra.mxu0 %v247_v9 }
  0x1c   :  { %249 = vmatprep.subr.bf16.mxu0 %v307_v1 }
  0x1d   :  { %278 = vset.pattern.permute.xlu0 %v306_v0 }
  0x1f   :  { %251 = vmatpush3.bf16.msra.mxu0 %v250_v13 }
  0x20   :  { %252 = vmatprep.subr.bf16.mxu0 %v307_v1 }
  0x23   :  { %254 = vmatpush3.bf16.msra.mxu0 %v253_v17 }
  0x24   :  { %255 = vmatprep.subr.bf16.mxu0 %v307_v1 }
  0x27   :  { %257 = vmatpush3.bf16.msra.mxu0 %v256_v20 }
  0x28   :  { %258 = vmatprep.subr.bf16.mxu0 %v307_v1 }
  0x2b   :  { %260 = vmatpush3.bf16.msra.mxu0 %v259_v23 }
  0x2c   :  { %261 = vmatprep.subr.bf16.mxu0 %v307_v1 }
  0x2f   :  { %263 = vmatpush3.bf16.msra.mxu0 %v262_v26 }
  0x30   :  { %264 = vmatprep.subr.bf16.mxu0 %v307_v1 }
  0x33   :  { %266 = vmatpush3.bf16.msra.mxu0 %v265_v29 }
  0x93   :  { %v34_v30 = vpop.permute.xlu0 %33 }
  0x94   :  { %v56_v34 = vpop.permute.xlu1 %55  ;;  %v40_v36 = vmul.f32 %v184_v31, %v34_v30 }
  0x95   :  { %v62_v38 = vmul.f32 %v186_v33, %v56_v34 }
  0x98   :  { %v44_v35 = vpop.permute.xlu0 %43 }
  0x99   :  { %v50_v37 = vmul.f32 %v185_v32, %v44_v35 }
  0x9b   :  { %v51_v39 = vadd.f32 %v50_v37, %v40_v36 }
  0x9d   :  { %v63_v41 = vadd.f32 %v62_v38, %v51_v39 }
  0x9f   :  { %v69_v42 = vadd.f32 %v187_v40, %v63_v41 }
  0xa1   :  { %v70_v43 = vmax.f32 %v69_v42, 0.0 }
  0xa3   :  { %241 = vmatmul.mubr.f32.vlgmr.msra.gmra.mrb[0].mxu0 %v70_v43 }
 0x176   :  { %v158_v45 = vpop.f32.mrb[0].mxu0 }
 0x177   :  { %v159_v46 = vadd.f32 %v188_v44, %v158_v45  ;;  %v242_v47 = vpop.f32.mrb[1].mxu0 }
 0x179   :  { %v162_v49 = vmax.f32 %v159_v46, 0.0 }
 0x17b   :  { %v168_v50 = vmul.f32 %v189_v48, %v162_v49 }
 0x17d   :  { %169 = vadd.xlane.f32.xlu1 %v168_v50 }
 0x20a   :  { %v170_v52 = vpop.xlane.xlu1 %169 }
 0x20b   :  { %v176_v53 = vadd.f32 %v190_v51, %v170_v52 }
 0x20d   :  { %178 = vst.msk [vmem:[%s355_s3] sm:$0xff] %vm177_vm1, %v176_v53 }
 0x20e   :  { %183 = vsyncpa [#allocation3], 1 }

</bundles_post_ra>
